<compile_context>
chip_gen: v7x
topology: tpu7x:2x2x1
jax: 0.10.0
libtpu: 0.0.40
codegen_flags: <defaults>
</compile_context>

<pallas_src>
import functools

import jax
import jax.numpy as jnp
import numpy as np
from jax.experimental import pallas as pl
from jax.experimental.pallas import tpu as pltpu


def _round_up(x, m):
    return (x + m - 1) // m * m


# ----------------------------- Pallas kernel -----------------------------

def _degrade_loss_kernel(ve_ref, fe_ref, nu_ref, loss_ref, *, num_views,
                         num_classes, cp):
    """Fused DegradeLoss over one batch tile.

    ve_ref:   (tile_n, V*Cp) view evidences, concatenated along lanes, zero-padded.
    fe_ref:   (tile_n, Cp)   fusion evidence, zero-padded.
    nu_ref:   (Cp, V*Cp)     column-normalized U, per-view blocks concatenated
                             along the output lane axis (resident across grid).
    loss_ref: (tile_n, 128)  per-row loss broadcast across lanes (lane-dense store).
    """
    ve = ve_ref[...]
    fe = fe_ref[...]

    # One MXU matmul yields fusion_e @ normed_u[v] for every view at once.
    proj = jnp.dot(fe, nu_ref[...], preferred_element_type=jnp.float32)
    diff = ve - proj
    sq = diff * diff

    n_rows = ve.shape[0]
    sum_cert = jnp.full((n_rows, 1), 1e-9, dtype=jnp.float32)
    weighted = jnp.zeros((n_rows, 1), dtype=jnp.float32)
    for v in range(num_views):                       # V is a small static constant
        seg = slice(v * cp, (v + 1) * cp)            # static, 128-aligned lane slice
        e_v = ve[:, seg]
        s_e = jnp.sum(e_v, axis=-1, keepdims=True)
        # Padded class lanes are zero, so sum(e + 1) over the real classes is
        # exactly sum(e) + num_classes.
        cert_v = s_e / (s_e + float(num_classes))
        view_loss = jnp.sum(sq[:, seg], axis=-1, keepdims=True)
        sum_cert = sum_cert + cert_v
        weighted = weighted + cert_v * view_loss

    # loss = sum_v (cert_v / sum_cert) * view_loss_v ; sum_cert is shared, so factor it.
    loss = weighted / sum_cert
    loss_ref[...] = jnp.broadcast_to(loss, loss_ref.shape)


# ----------------------------- wrapper -----------------------------

def degrade_loss_pallas(view_e, fusion_e, U, *, interpret=False):
    """view_e: dict {view_id: (N, C)}; fusion_e: (N, C); U: (V, C, C). Returns (N,)."""
    views = sorted(view_e)
    num_views = len(views)
    n, c = fusion_e.shape
    cp = _round_up(c, 128)
    tile_n = 128 if n <= 128 else 256
    np_rows = _round_up(n, tile_n)
    f32 = jnp.float32

    # --- parameter preprocessing (outside the kernel) ---
    u_f32 = U.astype(f32)
    normed_u = u_f32 / jnp.sum(u_f32, axis=-2, keepdims=True)            # (V, C, C)
    nu_pad = jnp.zeros((num_views, cp, cp), f32).at[:, :c, :c].set(normed_u)
    nu_cat = jnp.transpose(nu_pad, (1, 0, 2)).reshape(cp, num_views * cp)  # (Cp, V*Cp)

    # --- input layout plumbing: lane-pad classes, pad batch to the tile size ---
    ve = jnp.stack([view_e[v].astype(f32) for v in views], axis=0)       # (V, N, C)
    ve_pad = jnp.zeros((num_views, np_rows, cp), f32).at[:, :n, :c].set(ve)
    ve_cat = jnp.transpose(ve_pad, (1, 0, 2)).reshape(np_rows, num_views * cp)
    fe_pad = jnp.zeros((np_rows, cp), f32).at[:n, :c].set(fusion_e.astype(f32))

    kern = functools.partial(_degrade_loss_kernel, num_views=num_views,
                             num_classes=c, cp=cp)
    out = pl.pallas_call(
        kern,
        out_shape=jax.ShapeDtypeStruct((np_rows, 128), f32),
        grid=(np_rows // tile_n,),
        in_specs=[
            pl.BlockSpec((tile_n, num_views * cp), lambda i: (i, 0)),
            pl.BlockSpec((tile_n, cp), lambda i: (i, 0)),
            pl.BlockSpec((cp, num_views * cp), lambda i: (0, 0)),   # resident weights
        ],
        out_specs=pl.BlockSpec((tile_n, 128), lambda i: (i, 0)),
        compiler_params=pltpu.CompilerParams(
            dimension_semantics=("parallel",),
            vmem_limit_bytes=32 * 1024 * 1024),
        interpret=interpret,
    )(ve_cat, fe_pad, nu_cat)
    return out[:n, 0]


class DegradeLoss:
    """Pallas/JAX port of the PyTorch DegradeLoss module (forward only)."""

    def __init__(self, num_views, num_classes):
        self.num_views = num_views
        self.num_classes = num_classes
        # Same init as nn.Parameter(torch.eye(num_classes).repeat(num_views, 1, 1)).
        self.U = jnp.tile(jnp.eye(num_classes, dtype=jnp.float32)[None],
                          (num_views, 1, 1))

    def __call__(self, view_e, fusion_e):
        return degrade_loss_pallas(view_e, fusion_e, self.U)


# ----------------------------- plain-JAX reference -----------------------------

def _degrade_loss_ref(view_e, fusion_e, U):
    certainty = {}
    sum_certainty = 1e-9
    for v, e in view_e.items():
        certainty[v] = jnp.sum(e, axis=-1) / jnp.sum(e + 1.0, axis=-1)
        sum_certainty = sum_certainty + certainty[v]
    normed_u = U / jnp.sum(U, axis=-2, keepdims=True)
    loss = jnp.zeros(fusion_e.shape[0], jnp.float32)
    for v, e in view_e.items():
        view_loss = jnp.sum((e - fusion_e @ normed_u[v]) ** 2, axis=-1)
        loss = loss + (certainty[v] / sum_certainty) * view_loss
    return loss


if __name__ == "__main__":
    num_views, num_classes, batch = 2, 4, 2

    key = jax.random.PRNGKey(0)
    k_u, k_f, *k_v = jax.random.split(key, 2 + num_views)

    module = DegradeLoss(num_views, num_classes)
    # Learnable parameter: identity init plus a small positive perturbation so the
    # column-normalization and projection paths are genuinely exercised.
    module.U = module.U + 0.1 * jnp.abs(
        jax.random.normal(k_u, (num_views, num_classes, num_classes), jnp.float32))

    # Evidences are non-negative (outputs of softplus/ReLU heads upstream).
    view_e = {v: 2.0 * jnp.abs(jax.random.normal(k_v[v], (batch, num_classes),
                                                 jnp.float32))
              for v in range(num_views)}
    fusion_e = 2.0 * jnp.abs(jax.random.normal(k_f, (batch, num_classes),
                                               jnp.float32))

    loss = module(view_e, fusion_e)
    jax.block_until_ready(loss)

    ref = _degrade_loss_ref(view_e, fusion_e, module.U)
    np.testing.assert_allclose(np.asarray(loss), np.asarray(ref),
                               rtol=1e-4, atol=1e-5)
    print("KERNEL_OK")
</pallas_src>

<mosaic_0001>
module attributes {stable_mosaic.version = 11 : i64} {
  func.func @_degrade_loss_kernel(%arg0: i32, %arg1: memref<128x256xf32, #tpu.memory_space<vmem>>, %arg2: memref<128x128xf32, #tpu.memory_space<vmem>>, %arg3: memref<128x256xf32, #tpu.memory_space<vmem>>, %arg4: memref<128x128xf32, #tpu.memory_space<vmem>>) attributes {dimension_semantics = [#tpu.dimension_semantics<parallel>], iteration_bounds = array<i64: 1>, scalar_prefetch = 0 : i64, scratch_operands = 0 : i64, tpu.core_type = #tpu.core_type<tc>, window_params = [{transform_indices = @transform_0, window_bounds = array<i64: 128, 256>}, {transform_indices = @transform_1, window_bounds = array<i64: 128, 128>}, {pipeline_mode = #tpu.pipeline_mode<synchronous>, transform_indices = @transform_2, window_bounds = array<i64: 128, 256>}, {transform_indices = @transform_3, window_bounds = array<i64: 128, 128>}]} {
    %c0 = arith.constant 0 : index
    %c0_0 = arith.constant 0 : index
    %0 = vector.load %arg1[%c0, %c0_0] : memref<128x256xf32, #tpu.memory_space<vmem>>, vector<128x256xf32>
    %c0_1 = arith.constant 0 : index
    %c0_2 = arith.constant 0 : index
    %1 = vector.load %arg2[%c0_1, %c0_2] : memref<128x128xf32, #tpu.memory_space<vmem>>, vector<128x128xf32>
    %c0_3 = arith.constant 0 : index
    %c0_4 = arith.constant 0 : index
    %2 = vector.load %arg3[%c0_3, %c0_4] : memref<128x256xf32, #tpu.memory_space<vmem>>, vector<128x256xf32>
    %cst = arith.constant dense<0.000000e+00> : vector<128x256xf32>
    %3 = tpu.matmul %1, %2, %cst {dimension_numbers = #tpu.dot_dimension_numbers<[1], [0], [0], [1], [0, 0, 1, 1], [], []>} : vector<128x128xf32>, vector<128x256xf32>, vector<128x256xf32> -> vector<128x256xf32>
    %4 = arith.subf %0, %3 : vector<128x256xf32>
    %5 = arith.mulf %4, %4 : vector<128x256xf32>
    %cst_5 = arith.constant 9.99999971E-10 : f32
    %6 = vector.broadcast %cst_5 : f32 to vector<128x1xf32>
    %cst_6 = arith.constant 0.000000e+00 : f32
    %7 = vector.broadcast %cst_6 : f32 to vector<128x1xf32>
    %8 = vector.extract_strided_slice %0 {offsets = [0, 0], sizes = [128, 128], strides = [1, 1]} : vector<128x256xf32> to vector<128x128xf32>
    %cst_7 = arith.constant dense<0.000000e+00> : vector<128xf32>
    %9 = vector.multi_reduction <add>, %8, %cst_7 [1] : vector<128x128xf32> to vector<128xf32>
    %10 = vector.shape_cast %9 : vector<128xf32> to vector<128x1xf32>
    %cst_8 = arith.constant 4.000000e+00 : f32
    %11 = vector.broadcast %cst_8 : f32 to vector<128x1xf32>
    %12 = arith.addf %10, %11 : vector<128x1xf32>
    %13 = arith.divf %10, %12 : vector<128x1xf32>
    %14 = vector.extract_strided_slice %5 {offsets = [0, 0], sizes = [128, 128], strides = [1, 1]} : vector<128x256xf32> to vector<128x128xf32>
    %cst_9 = arith.constant dense<0.000000e+00> : vector<128xf32>
    %15 = vector.multi_reduction <add>, %14, %cst_9 [1] : vector<128x128xf32> to vector<128xf32>
    %16 = vector.shape_cast %15 : vector<128xf32> to vector<128x1xf32>
    %17 = arith.addf %6, %13 : vector<128x1xf32>
    %18 = arith.mulf %13, %16 : vector<128x1xf32>
    %19 = arith.addf %7, %18 : vector<128x1xf32>
    %20 = vector.extract_strided_slice %0 {offsets = [0, 128], sizes = [128, 128], strides = [1, 1]} : vector<128x256xf32> to vector<128x128xf32>
    %cst_10 = arith.constant dense<0.000000e+00> : vector<128xf32>
    %21 = vector.multi_reduction <add>, %20, %cst_10 [1] : vector<128x128xf32> to vector<128xf32>
    %22 = vector.shape_cast %21 : vector<128xf32> to vector<128x1xf32>
    %cst_11 = arith.constant 4.000000e+00 : f32
    %23 = vector.broadcast %cst_11 : f32 to vector<128x1xf32>
    %24 = arith.addf %22, %23 : vector<128x1xf32>
    %25 = arith.divf %22, %24 : vector<128x1xf32>
    %26 = vector.extract_strided_slice %5 {offsets = [0, 128], sizes = [128, 128], strides = [1, 1]} : vector<128x256xf32> to vector<128x128xf32>
    %cst_12 = arith.constant dense<0.000000e+00> : vector<128xf32>
    %27 = vector.multi_reduction <add>, %26, %cst_12 [1] : vector<128x128xf32> to vector<128xf32>
    %28 = vector.shape_cast %27 : vector<128xf32> to vector<128x1xf32>
    %29 = arith.addf %17, %25 : vector<128x1xf32>
    %30 = arith.mulf %25, %28 : vector<128x1xf32>
    %31 = arith.addf %19, %30 : vector<128x1xf32>
    %32 = arith.divf %31, %29 : vector<128x1xf32>
    %33 = vector.shape_cast %32 : vector<128x1xf32> to vector<128x1xf32>
    %34 = vector.broadcast %33 : vector<128x1xf32> to vector<128x128xf32>
    %c0_13 = arith.constant 0 : index
    %c0_14 = arith.constant 0 : index
    %35 = vector.load %arg4[%c0_13, %c0_14] : memref<128x128xf32, #tpu.memory_space<vmem>>, vector<128x128xf32>
    tpu.vector_store %arg4[%c0_13, %c0_14], %34 {strides = array<i32>} : memref<128x128xf32, #tpu.memory_space<vmem>>, vector<128x128xf32>,
    return
  }
  func.func @transform_0(%arg0: i32) -> (i32, i32) {
    %c0_i32 = arith.constant 0 : i32
    %c0_i32_0 = arith.constant 0 : i32
    return %arg0, %c0_i32 : i32, i32
  }
  func.func @transform_1(%arg0: i32) -> (i32, i32) {
    %c0_i32 = arith.constant 0 : i32
    %c0_i32_0 = arith.constant 0 : i32
    return %arg0, %c0_i32 : i32, i32
  }
  func.func @transform_2(%arg0: i32) -> (i32, i32) {
    %c0_i32 = arith.constant 0 : i32
    %c0_i32_0 = arith.constant 0 : i32
    %c0_i32_1 = arith.constant 0 : i32
    return %c0_i32, %c0_i32_0 : i32, i32
  }
  func.func @transform_3(%arg0: i32) -> (i32, i32) {
    %c0_i32 = arith.constant 0 : i32
    %c0_i32_0 = arith.constant 0 : i32
    return %arg0, %c0_i32 : i32, i32
  }
}

</mosaic_0001>

<bundles_post_ra>
// kernel: tpu_custom_call.1
= control target key start
LH: loop header
LB: loop body
LE: loop exit
PB: predicated region body
PF: predicated region fallthrough
CT: control target
= control target key end

     0   :  { %8 = vsyncpa [#allocation3], 0  ;;  %s1419_s0 = inlined_call_operand.hbm [shape: f32[128,256], index: 0, kind: input, shape index: {}]   ;;  %s1420_s1 = inlined_call_operand.hbm [shape: f32[128,128], index: 1, kind: input, shape index: {}]   ;;  %s1421_s2 = inlined_call_operand.hbm [shape: f32[128,256], index: 2, kind: input, shape index: {}]   ;;  %s1422_s3 = inlined_call_operand.hbm [shape: f32[128,128], index: 3, kind: output, shape index: {}]  }
   0x1   :  { %9 = vsyncpa [#allocation6], 0 }
   0x2   :  { %10 = vsyncpa [#allocation4], 0  ;;  %s994_s12 = smov [#allocation5]   ;;  %s900_s16 = scalar_lea.hbm %s1420_s1, 2048 }
   0x3   :  { %s28_s13 = sshll.u32 %s994_s12, 4  ;;  %p901_p0 = scmp.ne.s32.totalorder %s1420_s1, %s900_s16  ;;  %s29_s13 = int_to_ptr.vmem [resolvable:$true] %s28_s13 }
   0x4   :  { %p904_p1 = scmp.lt.u32.totalorder %s900_s16, %s1420_s1 }
   0x6   :  { %p906_p2 = pnand %p904_p1, %p901_p0 }
   0x8   :  { %909 = shalt.err (!%p906_p2)
}
   0x9   :  { %s910_s21 = scalar_lea.vmem %s29_s13, 2048  ;;  %p915_p4 = scmp.lt.s32.totalorder %s29_s13, %s29_s13 }
   0xa   :  { %p911_p3 = scmp.ne.s32.totalorder %s29_s13, %s910_s21  ;;  %p916_p5 = scmp.lt.s32.totalorder %s910_s21, %s910_s21 }
   0xc   :  { %p917_p6 = por %p916_p5, %p915_p4 }
   0xe   :  { %p918_p7 = pnand %p917_p6, %p911_p3 }
  0x10   :  { %921 = shalt.err (!%p918_p7)
}
  0x11   :  { %s995_s22 = smov 128   ;;  %s996_s23 = smov 8  }
  0x12   :  { %34 = dma.hbm_to_vmem [thread:$0]  %s1420_s1, 2048, %s29_s13, [#allocation6], %s995_s22, %s995_s22, %s996_s23  }
  0x13   :  { %s997_s26 = smov [#allocation2]   ;;  %s922_s30 = scalar_lea.hbm %s1419_s0, 4096 }
  0x14   :  { %s16_s27 = sshll.u32 %s997_s26, 4  ;;  %p923_p8 = scmp.ne.s32.totalorder %s1419_s0, %s922_s30  ;;  %s17_s27 = int_to_ptr.vmem [resolvable:$true] %s16_s27 }
  0x15   :  { %p926_p9 = scmp.lt.u32.totalorder %s922_s30, %s1419_s0 }
  0x17   :  { %p928_p10 = pnand %p926_p9, %p923_p8 }
  0x19   :  { %931 = shalt.err (!%p928_p10)
}
  0x1a   :  { %s932_s8 = scalar_lea.vmem %s17_s27, 4096  ;;  %p937_p12 = scmp.lt.s32.totalorder %s17_s27, %s17_s27 }
  0x1b   :  { %p933_p11 = scmp.ne.s32.totalorder %s17_s27, %s932_s8  ;;  %p938_p13 = scmp.lt.s32.totalorder %s932_s8, %s932_s8 }
  0x1d   :  { %p939_p0 = por %p938_p13, %p937_p12 }
  0x1f   :  { %p940_p1 = pnand %p939_p0, %p933_p11 }
  0x21   :  { %943 = shalt.err (!%p940_p1)
}
  0x22   :  { %s998_s1 = smov 256   ;;  %s999_s9 = smov 16  }
  0x23   :  { %22 = dma.hbm_to_vmem [thread:$0]  %s1419_s0, 4096, %s17_s27, [#allocation3], %s998_s1, %s998_s1, %s999_s9  }
  0x24   :  { %s1000_s12 = smov [#allocation7]   ;;  %s944_s16 = scalar_lea.hbm %s1421_s2, 4096 }
  0x25   :  { %s40_s13 = sshll.u32 %s1000_s12, 4  ;;  %p945_p2 = scmp.ne.s32.totalorder %s1421_s2, %s944_s16  ;;  %s41_s13 = int_to_ptr.vmem [resolvable:$true] %s40_s13 }
  0x26   :  { %p948_p3 = scmp.lt.u32.totalorder %s944_s16, %s1421_s2 }
  0x28   :  { %p950_p4 = pnand %p948_p3, %p945_p2 }
  0x2a   :  { %953 = shalt.err (!%p950_p4)
}
  0x2b   :  { %s954_s21 = scalar_lea.vmem %s41_s13, 4096  ;;  %p959_p6 = scmp.lt.s32.totalorder %s41_s13, %s41_s13 }
  0x2c   :  { %p955_p5 = scmp.ne.s32.totalorder %s41_s13, %s954_s21  ;;  %p960_p7 = scmp.lt.s32.totalorder %s954_s21, %s954_s21 }
  0x2e   :  { %p961_p8 = por %p960_p7, %p959_p6 }
  0x30   :  { %p962_p9 = pnand %p961_p8, %p955_p5 }
  0x32   :  { %965 = shalt.err (!%p962_p9)
}
  0x33   :  { %46 = dma.hbm_to_vmem [thread:$0]  %s1421_s2, 4096, %s41_s13, [#allocation6], %s998_s1, %s998_s1, %s999_s9  }
  0x34   :  { %988 = dma.done.wait [#allocation3], 4096  }
  0x35   :  { %989 = vsyncadd [#allocation3], 4294963200 }
  0x36   :  { %990 = dma.done.wait [#allocation6], 6144  }
  0x37   :  { %991 = vsyncadd [#allocation6], 4294961152  ;;  %v1001_v0 = vmov 0.0   ;;  %v105_v1 = vld [vmem:[#allocation7 + $0x8] sm:$0xff]  ;;  %v107_v2 = vld [vmem:[#allocation7 + $0x18] sm:$0xff]  ;;  %s1002_s2 = smov [#allocation8]  }
  0x38   :  { %200 = vmatprep.mubr.f32.mxu0 %v1001_v0  ;;  %248 = vmatprep.mubr.f32.mxu1 %v1001_v0  ;;  %v104_v3 = vld [vmem:[#allocation7] sm:$0xff]  ;;  %v747_v4 = vpack.c.bf16 %v107_v2, %v105_v1  ;;  %v106_v5 = vld [vmem:[#allocation7 + $0x10] sm:$0xff]  ;;  %v109_v6 = vld [vmem:[#allocation7 + $0x28] sm:$0xff]  ;;  %s734_s25 = sshll.u32 %s1002_s2, 4  ;;  %s735_s25 = int_to_ptr.vmem [resolvable:$true] %s734_s25 }
  0x39   :  { %v111_v7 = vld [vmem:[#allocation7 + $0x38] sm:$0xff]  ;;  %v749_v8 = vpack.c.bf16 %v106_v5, %v104_v3  ;;  %v108_v10 = vld [vmem:[#allocation7 + $0x20] sm:$0xff]  ;;  %v110_v11 = vld [vmem:[#allocation7 + $0x30] sm:$0xff]  ;;  %s966_s26 = scalar_lea.vmem %s735_s25, 2048  ;;  %p971_p11 = scmp.lt.s32.totalorder %s735_s25, %s735_s25 }
  0x3a   :  { %v751_v9 = vpack.c.bf16 %v111_v7, %v109_v6  ;;  %v113_v12 = vld [vmem:[#allocation7 + $0x48] sm:$0xff]  ;;  %748 = vmatprep.subr.bf16.mxu0 %v747_v4  ;;  %779 = vmatprep.subr.bf16.mxu1 %v747_v4  ;;  %v115_v13 = vld [vmem:[#allocation7 + $0x58] sm:$0xff]  ;;  %v753_v14 = vpack.c.bf16 %v110_v11, %v108_v10  ;;  %v112_v16 = vld [vmem:[#allocation7 + $0x40] sm:$0xff]  ;;  %p967_p10 = scmp.ne.s32.totalorder %s735_s25, %s966_s26  ;;  %p972_p12 = scmp.lt.s32.totalorder %s966_s26, %s966_s26 }
  0x3b   :  { %750 = vmatpush1.bf16.msra.mxu0 %v749_v8  ;;  %787 = vmatpush1.bf16.msra.mxu1 %v749_v8  ;;  %v755_v15 = vpack.c.bf16 %v115_v13, %v113_v12  ;;  %v114_v17 = vld [vmem:[#allocation7 + $0x50] sm:$0xff]  ;;  %v117_v18 = vld [vmem:[#allocation7 + $0x68] sm:$0xff]  ;;  %v119_v19 = vld [vmem:[#allocation7 + $0x78] sm:$0xff] }
  0x3c   :  { %752 = vmatprep.subr.bf16.mxu0 %v751_v9  ;;  %780 = vmatprep.subr.bf16.mxu1 %v751_v9  ;;  %v757_v20 = vpack.c.bf16 %v114_v17, %v112_v16  ;;  %v759_v21 = vpack.c.bf16 %v119_v19, %v117_v18  ;;  %v116_v22 = vld [vmem:[#allocation7 + $0x60] sm:$0xff]  ;;  %v118_v23 = vld [vmem:[#allocation7 + $0x70] sm:$0xff]  ;;  %v121_v24 = vld [vmem:[#allocation7 + $0x88] sm:$0xff]  ;;  %p973_p13 = por %p972_p12, %p971_p11 }
  0x3d   :  { %v123_v25 = vld [vmem:[#allocation7 + $0x98] sm:$0xff]  ;;  %v761_v26 = vpack.c.bf16 %v118_v23, %v116_v22  ;;  %v120_v28 = vld [vmem:[#allocation7 + $0x80] sm:$0xff]  ;;  %v122_v29 = vld [vmem:[#allocation7 + $0x90] sm:$0xff] }
  0x3e   :  { %v763_v27 = vpack.c.bf16 %v123_v25, %v121_v24  ;;  %v125_v30 = vld [vmem:[#allocation7 + $0xa8] sm:$0xff]  ;;  %v127_v31 = vld [vmem:[#allocation7 + $0xb8] sm:$0xff]  ;;  %v765_v32 = vpack.c.bf16 %v122_v29, %v120_v28  ;;  %v1064_v33 = vld [vmem:[#allocation2] sm:$0xff]  ;;  %p974_p0 = pnand %p973_p13, %p967_p10 }
  0x3f   :  { %754 = vmatpush1.bf16.msra.mxu0 %v753_v14  ;;  %788 = vmatpush1.bf16.msra.mxu1 %v753_v14  ;;  %v1066_v34 = vld [vmem:[#allocation2 + $0x20] sm:$0xff]  ;;  %v767_v35 = vpack.c.bf16 %v127_v31, %v125_v30  ;;  %v126_v37 = vld [vmem:[#allocation7 + $0xb0] sm:$0xff]  ;;  %v129_v38 = vld [vmem:[#allocation7 + $0xc8] sm:$0xff] }
  0x40   :  { %756 = vmatprep.subr.bf16.mxu0 %v755_v15  ;;  %781 = vmatprep.subr.bf16.mxu1 %v755_v15  ;;  %v124_v36 = vld [vmem:[#allocation7 + $0xa0] sm:$0xff]  ;;  %v131_v39 = vld [vmem:[#allocation7 + $0xd8] sm:$0xff]  ;;  %v1070_v40 = vld [vmem:[#allocation2 + $0x10] sm:$0xff] }
  0x41   :  { %361 = vadd.xlane.f32.xlu0 %v1064_v33  ;;  %365 = vadd.xlane.f32.xlu1 %v1066_v34  ;;  %v1072_v41 = vld [vmem:[#allocation2 + $0x30] sm:$0xff]  ;;  %v769_v42 = vpack.c.bf16 %v126_v37, %v124_v36  ;;  %v771_v43 = vpack.c.bf16 %v131_v39, %v129_v38  ;;  %v128_v44 = vld [vmem:[#allocation7 + $0xc0] sm:$0xff]  ;;  %v133_v46 = vld [vmem:[#allocation7 + $0xe8] sm:$0xff] }
  0x42   :  { %v130_v45 = vld [vmem:[#allocation7 + $0xd0] sm:$0xff]  ;;  %v135_v47 = vld [vmem:[#allocation7 + $0xf8] sm:$0xff]  ;;  %v1076_v48 = vld [vmem:[#allocation2 + $0x40] sm:$0xff] }
  0x43   :  { %758 = vmatpush1.bf16.msra.mxu0 %v757_v20  ;;  %789 = vmatpush1.bf16.msra.mxu1 %v757_v20  ;;  %v1078_v49 = vld [vmem:[#allocation2 + $0x50] sm:$0xff]  ;;  %v773_v50 = vpack.c.bf16 %v130_v45, %v128_v44  ;;  %v775_v51 = vpack.c.bf16 %v135_v47, %v133_v46  ;;  %v132_v52 = vld [vmem:[#allocation7 + $0xe0] sm:$0xff]  ;;  %v89_v63 = vld [vmem:[#allocation5 + $0x8] sm:$0xff] }
  0x44   :  { %760 = vmatprep.subr.bf16.mxu0 %v759_v21  ;;  %782 = vmatprep.subr.bf16.mxu1 %v759_v21  ;;  %v134_v53 = vld [vmem:[#allocation7 + $0xf0] sm:$0xff]  ;;  %v1082_v54 = vld [vmem:[#allocation2 + $0x60] sm:$0xff]  ;;  %v97_v1 = vld [vmem:[#allocation5 + $0x48] sm:$0xff] }
  0x45   :  { %363 = vadd.xlane.f32.xlu0 %v1070_v40  ;;  %367 = vadd.xlane.f32.xlu1 %v1072_v41  ;;  %v1084_v55 = vld [vmem:[#allocation2 + $0x70] sm:$0xff]  ;;  %v777_v56 = vpack.c.bf16 %v134_v53, %v132_v52  ;;  %v1088_v57 = vld [vmem:[#allocation2 + $0x80] sm:$0xff]  ;;  %v91_v8 = vld [vmem:[#allocation5 + $0x18] sm:$0xff] }
  0x46   :  { %v1090_v58 = vld [vmem:[#allocation2 + $0x90] sm:$0xff]  ;;  %v88_v59 = vld [vmem:[#allocation5] sm:$0xff]  ;;  %v99_v9 = vld [vmem:[#allocation5 + $0x58] sm:$0xff] }
  0x47   :  { %762 = vmatpush1.bf16.msra.mxu0 %v761_v26  ;;  %790 = vmatpush1.bf16.msra.mxu1 %v761_v26  ;;  %v96_v60 = vld [vmem:[#allocation5 + $0x40] sm:$0xff]  ;;  %v1096_v62 = vld [vmem:[#allocation2 + $0xb0] sm:$0xff]  ;;  %v1118_v10 = vld [vmem:[#allocation2 + $0x8] sm:$0xff] }
  0x48   :  { %764 = vmatprep.subr.bf16.mxu0 %v763_v27  ;;  %783 = vmatprep.subr.bf16.mxu1 %v763_v27  ;;  %v1094_v61 = vld [vmem:[#allocation2 + $0xa0] sm:$0xff]  ;;  %v1104_v3 = vld [vmem:[#allocation2 + $0xd0] sm:$0xff]  ;;  %v1120_v11 = vld [vmem:[#allocation2 + $0x18] sm:$0xff] }
  0x49   :  { %369 = vadd.xlane.f32.xlu0 %v1076_v48  ;;  %371 = vadd.xlane.f32.xlu1 %v1078_v49  ;;  %v1102_v2 = vld [vmem:[#allocation2 + $0xc0] sm:$0xff]  ;;  %v90_v4 = vld [vmem:[#allocation5 + $0x10] sm:$0xff]  ;;  %v1126_v14 = vld [vmem:[#allocation2 + $0x28] sm:$0xff] }
  0x4a   :  { %v98_v5 = vld [vmem:[#allocation5 + $0x50] sm:$0xff]  ;;  %v1110_v6 = vld [vmem:[#allocation2 + $0xe0] sm:$0xff]  ;;  %v1128_v15 = vld [vmem:[#allocation2 + $0x38] sm:$0xff] }
  0x4b   :  { %766 = vmatpush1.bf16.msra.mxu0 %v765_v32  ;;  %791 = vmatpush1.bf16.msra.mxu1 %v765_v32  ;;  %v1112_v7 = vld [vmem:[#allocation2 + $0xf0] sm:$0xff]  ;;  %v92_v12 = vld [vmem:[#allocation5 + $0x20] sm:$0xff]  ;;  %v93_v16 = vld [vmem:[#allocation5 + $0x28] sm:$0xff] }
  0x4c   :  { %768 = vmatprep.subr.bf16.mxu0 %v767_v35  ;;  %784 = vmatprep.subr.bf16.mxu1 %v767_v35  ;;  %v100_v13 = vld [vmem:[#allocation5 + $0x60] sm:$0xff]  ;;  %v101_v17 = vld [vmem:[#allocation5 + $0x68] sm:$0xff]  ;;  %v1134_v18 = vld [vmem:[#allocation2 + $0x58] sm:$0xff] }
  0x4d   :  { %373 = vadd.xlane.f32.xlu0 %v1082_v54  ;;  %375 = vadd.xlane.f32.xlu1 %v1084_v55  ;;  %v1136_v19 = vld [vmem:[#allocation2 + $0x48] sm:$0xff]  ;;  %v94_v20 = vld [vmem:[#allocation5 + $0x30] sm:$0xff]  ;;  %v1142_v22 = vld [vmem:[#allocation2 + $0x78] sm:$0xff] }
  0x4e   :  { %v102_v21 = vld [vmem:[#allocation5 + $0x70] sm:$0xff]  ;;  %v1144_v23 = vld [vmem:[#allocation2 + $0x68] sm:$0xff]  ;;  %v95_v24 = vld [vmem:[#allocation5 + $0x38] sm:$0xff] }
  0x4f   :  { %770 = vmatpush1.bf16.msra.mxu0 %v769_v42  ;;  %792 = vmatpush1.bf16.msra.mxu1 %v769_v42  ;;  %v103_v25 = vld [vmem:[#allocation5 + $0x78] sm:$0xff]  ;;  %v1152_v27 = vld [vmem:[#allocation2 + $0x88] sm:$0xff] }
  0x50   :  { %772 = vmatprep.subr.bf16.mxu0 %v771_v43  ;;  %785 = vmatprep.subr.bf16.mxu1 %v771_v43  ;;  %v1150_v26 = vld [vmem:[#allocation2 + $0x98] sm:$0xff]  ;;  %v1158_v29 = vld [vmem:[#allocation2 + $0xa8] sm:$0xff] }
  0x51   :  { %377 = vadd.xlane.f32.xlu0 %v1088_v57  ;;  %379 = vadd.xlane.f32.xlu1 %v1090_v58  ;;  %v1156_v28 = vld [vmem:[#allocation2 + $0xb8] sm:$0xff]  ;;  %v1164_v30 = vld [vmem:[#allocation2 + $0xc8] sm:$0xff] }
  0x52   :  { %v1168_v31 = vld [vmem:[#allocation2 + $0xf8] sm:$0xff]  ;;  %v1170_v32 = vld [vmem:[#allocation2 + $0xe8] sm:$0xff] }
  0x53   :  { %774 = vmatpush1.bf16.msra.mxu0 %v773_v50  ;;  %793 = vmatpush1.bf16.msra.mxu1 %v773_v50 }
  0x54   :  { %776 = vmatprep.subr.bf16.mxu0 %v775_v51  ;;  %786 = vmatprep.subr.bf16.mxu1 %v775_v51 }
  0x55   :  { %381 = vadd.xlane.f32.xlu0 %v1094_v61  ;;  %383 = vadd.xlane.f32.xlu1 %v1096_v62 }
  0x57   :  { %778 = vmatpush1.bf16.msra.mxu0 %v777_v56  ;;  %794 = vmatpush1.bf16.msra.mxu1 %v777_v56 }
  0x59   :  { %385 = vadd.xlane.f32.xlu0 %v1102_v2  ;;  %387 = vadd.xlane.f32.xlu1 %v1104_v3 }
  0x5a   :  { %201 = vmatmul.mubr.f32.vlgmr.msra.gmra.mrb[0].mxu0 %v88_v59  ;;  %249 = vmatmul.mubr.f32.vlgmr.msra.gmra.mrb[0].mxu1 %v96_v60 }
  0x5b   :  { %206 = vmatprep.mubr.f32.mxu0 %v1001_v0  ;;  %254 = vmatprep.mubr.f32.mxu1 %v1001_v0 }
  0x5d   :  { %389 = vadd.xlane.f32.xlu0 %v1110_v6  ;;  %391 = vadd.xlane.f32.xlu1 %v1112_v7 }
  0x5e   :  { %207 = vmatmul.mubr.f32.gmra.mrb[2].mxu0 %v89_v63  ;;  %255 = vmatmul.mubr.f32.gmra.mrb[2].mxu1 %v97_v1 }
  0x5f   :  { %212 = vmatprep.mubr.f32.mxu0 %v1001_v0  ;;  %260 = vmatprep.mubr.f32.mxu1 %v1001_v0 }
  0x61   :  { %521 = vadd.xlane.f32.xlu0 %v1118_v10  ;;  %523 = vadd.xlane.f32.xlu1 %v1120_v11 }
  0x62   :  { %213 = vmatmul.mubr.f32.gmra.mrb[4].mxu0 %v90_v4  ;;  %261 = vmatmul.mubr.f32.gmra.mrb[4].mxu1 %v98_v5 }
  0x63   :  { %218 = vmatprep.mubr.f32.mxu0 %v1001_v0  ;;  %266 = vmatprep.mubr.f32.mxu1 %v1001_v0 }
  0x65   :  { %525 = vadd.xlane.f32.xlu0 %v1126_v14  ;;  %527 = vadd.xlane.f32.xlu1 %v1128_v15 }
  0x66   :  { %219 = vmatmul.mubr.f32.gmra.mrb[6].mxu0 %v91_v8  ;;  %267 = vmatmul.mubr.f32.gmra.mrb[6].mxu1 %v99_v9 }
  0x67   :  { %224 = vmatprep.mubr.f32.mxu0 %v1001_v0  ;;  %272 = vmatprep.mubr.f32.mxu1 %v1001_v0 }
  0x69   :  { %531 = vadd.xlane.f32.xlu1 %v1134_v18  ;;  %529 = vadd.xlane.f32.xlu0 %v1136_v19 }
  0x6a   :  { %225 = vmatmul.mubr.f32.gmra.mrb[8].mxu0 %v92_v12  ;;  %273 = vmatmul.mubr.f32.gmra.mrb[8].mxu1 %v100_v13 }
  0x6b   :  { %230 = vmatprep.mubr.f32.mxu0 %v1001_v0  ;;  %278 = vmatprep.mubr.f32.mxu1 %v1001_v0 }
  0x6d   :  { %535 = vadd.xlane.f32.xlu1 %v1142_v22  ;;  %533 = vadd.xlane.f32.xlu0 %v1144_v23 }
  0x6e   :  { %231 = vmatmul.mubr.f32.gmra.mrb[10].mxu0 %v93_v16  ;;  %279 = vmatmul.mubr.f32.gmra.mrb[10].mxu1 %v101_v17 }
  0x6f   :  { %236 = vmatprep.mubr.f32.mxu0 %v1001_v0  ;;  %284 = vmatprep.mubr.f32.mxu1 %v1001_v0 }
  0x71   :  { %539 = vadd.xlane.f32.xlu1 %v1150_v26  ;;  %537 = vadd.xlane.f32.xlu0 %v1152_v27 }
  0x72   :  { %237 = vmatmul.mubr.f32.gmra.mrb[12].mxu0 %v94_v20  ;;  %285 = vmatmul.mubr.f32.gmra.mrb[12].mxu1 %v102_v21 }
  0x73   :  { %242 = vmatprep.mubr.f32.mxu0 %v1001_v0  ;;  %290 = vmatprep.mubr.f32.mxu1 %v1001_v0  ;;  %v1162_v0 = vld [vmem:[#allocation2 + $0xd8] sm:$0xff] }
  0x75   :  { %543 = vadd.xlane.f32.xlu1 %v1156_v28  ;;  %541 = vadd.xlane.f32.xlu0 %v1158_v29 }
  0x76   :  { %243 = vmatmul.mubr.f32.gmra.mrb[14].mxu0 %v95_v24  ;;  %291 = vmatmul.mubr.f32.gmra.mrb[14].mxu1 %v103_v25 }
  0x79   :  { %547 = vadd.xlane.f32.xlu1 %v1162_v0  ;;  %545 = vadd.xlane.f32.xlu0 %v1164_v30 }
  0x7d   :  { %551 = vadd.xlane.f32.xlu1 %v1168_v31  ;;  %549 = vadd.xlane.f32.xlu0 %v1170_v32 }
  0xce   :  { %v1174_v35 = vpop.xlane.xlu0 %361  ;;  %v1176_v36 = vpop.xlane.xlu1 %365 }
  0xd2   :  { %v1178_v37 = vpop.xlane.xlu0 %363  ;;  %v1180_v38 = vpop.xlane.xlu1 %367 }
  0xd6   :  { %v1182_v39 = vpop.xlane.xlu0 %369  ;;  %v1184_v42 = vpop.xlane.xlu1 %371 }
  0xda   :  { %v374_v43 = vpop.xlane.xlu0 %373  ;;  %v376_v44 = vpop.xlane.xlu1 %375 }
  0xdb   :  { %v400_v63 = vadd.f32 4.0, %v376_v44  ;;  %v399_v1 = vadd.f32 4.0, %v374_v43 }
  0xdd   :  { %804 = vrcp.f32 %v400_v63 }
  0xde   :  { %v1186_v45 = vpop.xlane.xlu0 %377  ;;  %v1188_v46 = vpop.xlane.xlu1 %379  ;;  %806 = vrcp.f32 %v399_v1 }
  0xe2   :  { %v1190_v47 = vpop.xlane.xlu0 %381  ;;  %v1192_v50 = vpop.xlane.xlu1 %383 }
  0xe6   :  { %v1194_v51 = vpop.xlane.xlu0 %385  ;;  %v1196_v52 = vpop.xlane.xlu1 %387 }
  0xe7   :  { %1433 = vst [vmem:[#allocation12_spill] sm:$0xff] %v1194_v51  ;;  %1434 = vst [vmem:[#allocation13_spill] sm:$0xff] %v1196_v52  ;;  %v805_v20 = vpop.eup %804 }
  0xe8   :  { %v807_v21 = vpop.eup %806  ;;  %v1214_v24 = vmul.f32 %v805_v20, %v376_v44 }
  0xe9   :  { %v1216_v25 = vmul.f32 %v807_v21, %v374_v43 }
  0xea   :  { %v1198_v53 = vpop.xlane.xlu0 %389  ;;  %v1200_v56 = vpop.xlane.xlu1 %391  ;;  %1439 = vst [vmem:[#allocation18_spill] sm:$0xff] %v1214_v24 }
  0xeb   :  { %1435 = vst [vmem:[#allocation14_spill] sm:$0xff] %v1198_v53  ;;  %1436 = vst [vmem:[#allocation15_spill] sm:$0xff] %v1200_v56  ;;  %v480_v56 = vadd.f32 1e-09, %v1214_v24  ;;  %v479_v1 = vadd.f32 1e-09, %v1216_v25 }
  0xec   :  { %1440 = vst [vmem:[#allocation19_spill] sm:$0xff] %v1216_v25 }
  0xee   :  { %v1202_v59 = vpop.xlane.xlu0 %521  ;;  %v1204_v60 = vpop.xlane.xlu1 %523 }
  0xf2   :  { %v1206_v4 = vpop.xlane.xlu0 %525  ;;  %v1208_v5 = vpop.xlane.xlu1 %527 }
  0xf6   :  { %v1210_v8 = vpop.xlane.xlu1 %531  ;;  %v1212_v9 = vpop.xlane.xlu0 %529 }
  0xf7   :  { %1437 = vst [vmem:[#allocation16_spill] sm:$0xff] %v1210_v8  ;;  %1438 = vst [vmem:[#allocation17_spill] sm:$0xff] %v1212_v9 }
  0xfa   :  { %v536_v12 = vpop.xlane.xlu1 %535  ;;  %v534_v13 = vpop.xlane.xlu0 %533 }
  0xfb   :  { %v560_v16 = vadd.f32 4.0, %v536_v12  ;;  %v559_v17 = vadd.f32 4.0, %v534_v13 }
  0xfd   :  { %808 = vrcp.f32 %v560_v16 }
  0xfe   :  { %810 = vrcp.f32 %v559_v17 }
 0x107   :  { %v809_v63 = vpop.eup %808 }
 0x108   :  { %v811_v53 = vpop.eup %810  ;;  %v1220_v8 = vmul.f32 %v809_v63, %v536_v12 }
 0x109   :  { %v1222_v9 = vmul.f32 %v811_v53, %v534_v13 }
 0x10a   :  { %1441 = vst [vmem:[#allocation20_spill] sm:$0xff] %v1220_v8  ;;  %v1225_v52 = vadd.f32 %v1220_v8, %v480_v56 }
 0x10b   :  { %1442 = vst [vmem:[#allocation21_spill] sm:$0xff] %v1222_v9  ;;  %v1228_v16 = vadd.f32 %v1222_v9, %v479_v1 }
 0x10c   :  { %1443 = vst [vmem:[#allocation22_spill] sm:$0xff] %v1225_v52 }
 0x10d   :  { %1444 = vst [vmem:[#allocation23_spill] sm:$0xff] %v1228_v16 }
 0x12d   :  { %v202_v44 = vpop.f32.mrb[0].mxu0  ;;  %v250_v17 = vpop.f32.mrb[0].mxu1 }
 0x12e   :  { %v297_v43 = vsub.f32 %v1064_v33, %v202_v44  ;;  %v204_v20 = vpop.f32.mrb[1].mxu0  ;;  %v313_v21 = vsub.f32 %v1088_v57, %v250_v17  ;;  %v252_v24 = vpop.f32.mrb[1].mxu1 }
 0x12f   :  { %v298_v8 = vsub.f32 %v1118_v10, %v204_v20 }
 0x130   :  { %v329_v25 = vmul.f32 %v297_v43, %v297_v43  ;;  %v345_v63 = vmul.f32 %v313_v21, %v313_v21  ;;  %v314_v21 = vsub.f32 %v1152_v27, %v252_v24 }
 0x131   :  { %v208_v51 = vpop.f32.mrb[2].mxu0  ;;  %v256_v12 = vpop.f32.mrb[2].mxu1  ;;  %v330_v43 = vmul.f32 %v298_v8, %v298_v8 }
 0x132   :  { %v299_v53 = vsub.f32 %v1070_v40, %v208_v51  ;;  %v210_v13 = vpop.f32.mrb[3].mxu0  ;;  %441 = vadd.xlane.f32.xlu0 %v329_v25  ;;  %v315_v56 = vsub.f32 %v1090_v58, %v256_v12  ;;  %v258_v1 = vpop.f32.mrb[3].mxu1  ;;  %v346_v12 = vmul.f32 %v314_v21, %v314_v21 }
 0x133   :  { %v300_v40 = vsub.f32 %v1120_v11, %v210_v13 }
 0x134   :  { %v331_v9 = vmul.f32 %v299_v53, %v299_v53  ;;  %v347_v44 = vmul.f32 %v315_v56, %v315_v56 }
 0x135   :  { %v214_v52 = vpop.f32.mrb[4].mxu0  ;;  %v262_v33 = vpop.f32.mrb[4].mxu1  ;;  %v332_v53 = vmul.f32 %v300_v40, %v300_v40 }
 0x136   :  { %443 = vadd.xlane.f32.xlu1 %v331_v9  ;;  %457 = vadd.xlane.f32.xlu0 %v345_v63  ;;  %v216_v57 = vpop.f32.mrb[5].mxu0  ;;  %v264_v17 = vpop.f32.mrb[5].mxu1  ;;  %v301_v58 = vsub.f32 %v1066_v34, %v214_v52  ;;  %v316_v9 = vsub.f32 %v1150_v26, %v258_v1  ;;  %v317_v11 = vsub.f32 %v1094_v61, %v262_v33 }
 0x137   :  { %v302_v40 = vsub.f32 %v1126_v14, %v216_v57 }
 0x138   :  { %v333_v16 = vmul.f32 %v301_v58, %v301_v58  ;;  %v348_v13 = vmul.f32 %v316_v9, %v316_v9  ;;  %v318_v9 = vsub.f32 %v1158_v29, %v264_v17 }
 0x139   :  { %v220_v51 = vpop.f32.mrb[6].mxu0  ;;  %v268_v25 = vpop.f32.mrb[6].mxu1 }
 0x13a   :  { %459 = vadd.xlane.f32.xlu1 %v347_v44  ;;  %601 = vadd.xlane.f32.xlu0 %v330_v43  ;;  %v222_v10 = vpop.f32.mrb[7].mxu0  ;;  %v270_v20 = vpop.f32.mrb[7].mxu1  ;;  %v303_v27 = vsub.f32 %v1072_v41, %v220_v51  ;;  %v349_v43 = vmul.f32 %v317_v11, %v317_v11  ;;  %v319_v26 = vsub.f32 %v1096_v62, %v268_v25 }
 0x13b   :  { %v334_v51 = vmul.f32 %v302_v40, %v302_v40  ;;  %v350_v11 = vmul.f32 %v318_v9, %v318_v9 }
 0x13c   :  { %v335_v52 = vmul.f32 %v303_v27, %v303_v27  ;;  %v351_v41 = vmul.f32 %v319_v26, %v319_v26 }
 0x13d   :  { %v226_v63 = vpop.f32.mrb[8].mxu0  ;;  %v274_v56 = vpop.f32.mrb[8].mxu1 }
 0x13e   :  { %603 = vadd.xlane.f32.xlu1 %v332_v53  ;;  %617 = vadd.xlane.f32.xlu0 %v346_v12  ;;  %v228_v8 = vpop.f32.mrb[9].mxu0  ;;  %v276_v24 = vpop.f32.mrb[9].mxu1  ;;  %v304_v53 = vsub.f32 %v1128_v15, %v222_v10  ;;  %v305_v62 = vsub.f32 %v1076_v48, %v226_v63  ;;  %v321_v15 = vsub.f32 %v1102_v2, %v274_v56 }
 0x13f   :  { %v306_v63 = vsub.f32 %v1136_v19, %v228_v8  ;;  %v322_v40 = vsub.f32 %v1164_v30, %v276_v24 }
 0x140   :  { %v336_v57 = vmul.f32 %v304_v53, %v304_v53  ;;  %v353_v10 = vmul.f32 %v321_v15, %v321_v15  ;;  %v540_v53 = vpop.xlane.xlu1 %539 }
 0x141   :  { %v232_v44 = vpop.f32.mrb[10].mxu0  ;;  %v280_v34 = vpop.f32.mrb[10].mxu1  ;;  %v354_v56 = vmul.f32 %v322_v40, %v322_v40 }
 0x142   :  { %619 = vadd.xlane.f32.xlu1 %v348_v13  ;;  %445 = vadd.xlane.f32.xlu0 %v333_v16  ;;  %v234_v1 = vpop.f32.mrb[11].mxu0  ;;  %v282_v21 = vpop.f32.mrb[11].mxu1  ;;  %v320_v13 = vsub.f32 %v1156_v28, %v270_v20  ;;  %v323_v48 = vsub.f32 %v1104_v3, %v280_v34  ;;  %v338_v28 = vmul.f32 %v306_v63, %v306_v63 }
 0x143   :  { %v308_v20 = vsub.f32 %v1134_v18, %v234_v1 }
 0x144   :  { %v352_v29 = vmul.f32 %v320_v13, %v320_v13  ;;  %v355_v26 = vmul.f32 %v323_v48, %v323_v48  ;;  %v396_v13 = vadd.f32 4.0, %v1180_v38 }
 0x145   :  { %v238_v58 = vpop.f32.mrb[12].mxu0  ;;  %v286_v12 = vpop.f32.mrb[12].mxu1  ;;  %v340_v2 = vmul.f32 %v308_v20, %v308_v20 }
 0x146   :  { %447 = vadd.xlane.f32.xlu1 %v335_v52  ;;  %461 = vadd.xlane.f32.xlu0 %v349_v43  ;;  %v240_v61 = vpop.f32.mrb[13].mxu0  ;;  %v288_v33 = vpop.f32.mrb[13].mxu1  ;;  %v337_v52 = vmul.f32 %v305_v62, %v305_v62  ;;  %v307_v43 = vsub.f32 %v1078_v49, %v232_v44  ;;  %v309_v49 = vsub.f32 %v1082_v54, %v238_v58 }
 0x147   :  { %v324_v44 = vsub.f32 %v1162_v0, %v282_v21  ;;  %v325_v19 = vsub.f32 %v1110_v6, %v286_v12  ;;  %v310_v54 = vsub.f32 %v1144_v23, %v240_v61  ;;  %v326_v21 = vsub.f32 %v1170_v32, %v288_v33  ;;  %v538_v32 = vpop.xlane.xlu0 %537  ;;  %v1270_v62 = vpop.xlane.xlu1 %543 }
 0x148   :  { %v339_v17 = vmul.f32 %v307_v43, %v307_v43  ;;  %v394_v23 = vadd.f32 4.0, %v1178_v37  ;;  %v401_v61 = vadd.f32 4.0, %v1186_v45  ;;  %v554_v33 = vadd.f32 4.0, %v1204_v60 }
 0x149   :  { %v244_v27 = vpop.f32.mrb[14].mxu0  ;;  %v292_v16 = vpop.f32.mrb[14].mxu1  ;;  %v356_v8 = vmul.f32 %v324_v44, %v324_v44  ;;  %v357_v18 = vmul.f32 %v325_v19, %v325_v19  ;;  %v342_v0 = vmul.f32 %v310_v54, %v310_v54  ;;  %v358_v6 = vmul.f32 %v326_v21, %v326_v21 }
 0x14a   :  { %463 = vadd.xlane.f32.xlu1 %v351_v41  ;;  %605 = vadd.xlane.f32.xlu0 %v334_v51  ;;  %v246_v25 = vpop.f32.mrb[15].mxu0  ;;  %v294_v14 = vpop.f32.mrb[15].mxu1  ;;  %v341_v41 = vmul.f32 %v309_v49, %v309_v49  ;;  %v311_v3 = vsub.f32 %v1084_v55, %v244_v27  ;;  %v327_v30 = vsub.f32 %v1112_v7, %v292_v16  ;;  %v393_v7 = vadd.f32 4.0, %v1174_v35 }
 0x14b   :  { %v312_v1 = vsub.f32 %v1142_v22, %v246_v25  ;;  %v328_v58 = vsub.f32 %v1168_v31, %v294_v14  ;;  %v553_v22 = vadd.f32 4.0, %v1202_v59  ;;  %v402_v31 = vadd.f32 4.0, %v1188_v46  ;;  %v1268_v9 = vpop.xlane.xlu0 %541 }
 0x14c   :  { %v343_v34 = vmul.f32 %v311_v3, %v311_v3  ;;  %v359_v24 = vmul.f32 %v327_v30, %v327_v30  ;;  %812 = vrcp.f32 %v393_v7  ;;  %v561_v51 = vadd.f32 4.0, %v538_v32 }
 0x14d   :  { %v344_v55 = vmul.f32 %v312_v1, %v312_v1  ;;  %v360_v12 = vmul.f32 %v328_v58, %v328_v58  ;;  %814 = vrcp.f32 %v394_v23  ;;  %v562_v27 = vadd.f32 4.0, %v540_v53  ;;  %v1445_v58 = vld [vmem:[#allocation12_spill] sm:$0xff] }
 0x14e   :  { %607 = vadd.xlane.f32.xlu1 %v336_v57  ;;  %621 = vadd.xlane.f32.xlu0 %v350_v11  ;;  %816 = vrcp.f32 %v401_v61  ;;  %v395_v14 = vadd.f32 4.0, %v1176_v36  ;;  %v404_v49 = vadd.f32 4.0, %v1192_v50  ;;  %v398_v21 = vadd.f32 4.0, %v1184_v42 }
 0x14f   :  { %818 = vrcp.f32 %v553_v22 }
 0x150   :  { %820 = vrcp.f32 %v554_v33  ;;  %v1446_v33 = vld [vmem:[#allocation13_spill] sm:$0xff] }
 0x151   :  { %822 = vrcp.f32 %v402_v31  ;;  %v406_v31 = vadd.f32 4.0, %v1446_v33 }
 0x152   :  { %623 = vadd.xlane.f32.xlu1 %v352_v29  ;;  %449 = vadd.xlane.f32.xlu0 %v337_v52  ;;  %824 = vrcp.f32 %v561_v51  ;;  %v1277_v52 = vpop.xlane.xlu0 %545  ;;  %v403_v29 = vadd.f32 4.0, %v1190_v47  ;;  %v1447_v51 = vld [vmem:[#allocation17_spill] sm:$0xff] }
 0x153   :  { %826 = vrcp.f32 %v562_v27 }
 0x154   :  { %828 = vrcp.f32 %v395_v14 }
 0x155   :  { %830 = vrcp.f32 %v396_v13 }
 0x156   :  { %451 = vadd.xlane.f32.xlu1 %v339_v17  ;;  %465 = vadd.xlane.f32.xlu0 %v353_v10  ;;  %v813_v16 = vpop.eup %812  ;;  %v555_v10 = vadd.f32 4.0, %v1206_v4  ;;  %832 = vrcp.f32 %v403_v29 }
 0x157   :  { %v815_v25 = vpop.eup %814  ;;  %v1274_v11 = vmul.f32 %v813_v16, %v1174_v35 }
 0x158   :  { %v817_v57 = vpop.eup %816  ;;  %v1280_v15 = vmul.f32 %v815_v25, %v1178_v37  ;;  %v556_v37 = vadd.f32 4.0, %v1208_v5  ;;  %834 = vrcp.f32 %v555_v10  ;;  %v1448_v10 = vld [vmem:[#allocation16_spill] sm:$0xff] }
 0x159   :  { %v819_v43 = vpop.eup %818  ;;  %v473_v63 = vadd.f32 1e-09, %v1274_v11  ;;  %v1286_v35 = vmul.f32 %v817_v57, %v1186_v45  ;;  %v563_v45 = vadd.f32 4.0, %v1268_v9 }
 0x15a   :  { %467 = vadd.xlane.f32.xlu1 %v355_v26  ;;  %609 = vadd.xlane.f32.xlu0 %v338_v28  ;;  %v821_v17 = vpop.eup %820  ;;  %v570_v26 = vmul.f32 %v819_v43, %v1202_v59  ;;  %v1289_v28 = vpop.xlane.xlu1 %547  ;;  %v474_v40 = vadd.f32 1e-09, %v1280_v15  ;;  %836 = vrcp.f32 %v556_v37 }
 0x15b   :  { %v823_v48 = vpop.eup %822  ;;  %v481_v59 = vadd.f32 1e-09, %v1286_v35  ;;  %838 = vrcp.f32 %v404_v49 }
 0x15c   :  { %v825_v20 = vpop.eup %824  ;;  %v1302_v44 = vmul.f32 %v823_v48, %v1188_v46  ;;  %840 = vrcp.f32 %v563_v45  ;;  %v558_v48 = vadd.f32 4.0, %v1448_v10 }
 0x15d   :  { %v586_v3 = vmul.f32 %v825_v20, %v538_v32  ;;  %v827_v19 = vpop.eup %826 }
 0x15e   :  { %611 = vadd.xlane.f32.xlu1 %v340_v2  ;;  %625 = vadd.xlane.f32.xlu0 %v354_v56  ;;  %v1295_v2 = vmul.f32 %v821_v17, %v1204_v60  ;;  %v1297_v56 = vpop.xlane.xlu0 %549  ;;  %v482_v30 = vadd.f32 1e-09, %v1302_v44  ;;  %v1309_v54 = vmul.f32 %v827_v19, %v540_v53  ;;  %v557_v53 = vadd.f32 4.0, %v1447_v51 }
 0x15f   :  { %v641_v46 = vadd.f32 %v586_v3, %v481_v59 }
 0x160   :  { %v642_v61 = vadd.f32 %v1309_v54, %v482_v30 }
 0x162   :  { %627 = vadd.xlane.f32.xlu1 %v356_v8  ;;  %453 = vadd.xlane.f32.xlu0 %v341_v41  ;;  %v633_v41 = vadd.f32 %v570_v26, %v473_v63  ;;  %v634_v8 = vadd.f32 %v1295_v2, %v474_v40 }
 0x164   :  { %842 = vrcp.f32 %v633_v41 }
 0x165   :  { %844 = vrcp.f32 %v634_v8 }
 0x166   :  { %455 = vadd.xlane.f32.xlu1 %v343_v34  ;;  %469 = vadd.xlane.f32.xlu0 %v357_v18  ;;  %v1305_v34 = vpop.xlane.xlu1 %551  ;;  %v564_v18 = vadd.f32 4.0, %v1270_v62 }
 0x168   :  { %846 = vrcp.f32 %v564_v18 }
 0x169   :  { %848 = vrcp.f32 %v641_v46 }
 0x16a   :  { %471 = vadd.xlane.f32.xlu1 %v359_v24  ;;  %613 = vadd.xlane.f32.xlu0 %v342_v0  ;;  %v829_v24 = vpop.eup %828  ;;  %v397_v0 = vadd.f32 4.0, %v1182_v39 }
 0x16b   :  { %v831_v1 = vpop.eup %830  ;;  %v1315_v23 = vmul.f32 %v829_v24, %v1176_v36 }
 0x16c   :  { %v833_v7 = vpop.eup %832  ;;  %v1319_v32 = vmul.f32 %v831_v1, %v1180_v38  ;;  %850 = vrcp.f32 %v397_v0 }
 0x16d   :  { %v835_v22 = vpop.eup %834  ;;  %852 = vrcp.f32 %v398_v21  ;;  %v475_v13 = vadd.f32 1e-09, %v1315_v23  ;;  %v1326_v43 = vmul.f32 %v833_v7, %v1190_v47 }
 0x16e   :  { %615 = vadd.xlane.f32.xlu1 %v344_v55  ;;  %629 = vadd.xlane.f32.xlu0 %v358_v6  ;;  %v837_v25 = vpop.eup %836  ;;  %v1329_v38 = vmul.f32 %v835_v22, %v1206_v4  ;;  %v476_v17 = vadd.f32 1e-09, %v1319_v32 }
 0x16f   :  { %v839_v57 = vpop.eup %838  ;;  %v483_v19 = vadd.f32 1e-09, %v1326_v43 }
 0x170   :  { %v841_v29 = vpop.eup %840  ;;  %v1342_v8 = vmul.f32 %v839_v57, %v1192_v50 }
 0x171   :  { %v843_v20 = vpop.eup %842 }
 0x172   :  { %631 = vadd.xlane.f32.xlu1 %v360_v12  ;;  %v405_v12 = vadd.f32 4.0, %v1445_v58  ;;  %v845_v41 = vpop.eup %844 }
 0x174   :  { %854 = vrcp.f32 %v405_v12 }
 0x175   :  { %856 = vrcp.f32 %v642_v61 }
 0x176   :  { %858 = vrcp.f32 %v406_v31 }
 0x177   :  { %860 = vrcp.f32 %v557_v53 }
 0x178   :  { %862 = vrcp.f32 %v558_v48 }
 0x1bf   :  { %v442_v60 = vpop.xlane.xlu0 %441 }
 0x1c0   :  { %v489_v36 = vmul.f32 %v442_v60, %v1274_v11  ;;  %v1334_v11 = vmul.f32 %v837_v25, %v1208_v5  ;;  %v635_v5 = vadd.f32 %v1329_v38, %v475_v13  ;;  %v1346_v60 = vmul.f32 %v841_v29, %v1268_v9 }
 0x1c2   :  { %v643_v7 = vadd.f32 %v1346_v60, %v483_v19 }
 0x1c3   :  { %v444_v55 = vpop.xlane.xlu1 %443  ;;  %v458_v6 = vpop.xlane.xlu0 %457 }
 0x1c4   :  { %v490_v47 = vmul.f32 %v444_v55, %v1280_v15  ;;  %v497_v40 = vmul.f32 %v458_v6, %v1286_v35  ;;  %v847_v15 = vpop.eup %846  ;;  %v484_v6 = vadd.f32 1e-09, %v1342_v8 }
 0x1c5   :  { %v849_v30 = vpop.eup %848  ;;  %v1354_v12 = vmul.f32 %v847_v15, %v1270_v62 }
 0x1c6   :  { %v851_v50 = vpop.eup %850 }
 0x1c7   :  { %v460_v27 = vpop.xlane.xlu1 %459  ;;  %v602_v16 = vpop.xlane.xlu0 %601  ;;  %v1358_v25 = vmul.f32 %v851_v50, %v1182_v39  ;;  %v644_v62 = vadd.f32 %v1354_v12, %v484_v6 }
 0x1c8   :  { %v649_v14 = vmul.f32 %v602_v16, %v570_v26  ;;  %v565_v26 = vadd.f32 4.0, %v1277_v52  ;;  %v498_v0 = vmul.f32 %v460_v27, %v1302_v44  ;;  %v853_v55 = vpop.eup %852 }
 0x1c9   :  { %v855_v61 = vpop.eup %854  ;;  %v477_v39 = vadd.f32 1e-09, %v1358_v25 }
 0x1ca   :  { %v665_v63 = vadd.f32 %v649_v14, %v489_v36  ;;  %864 = vrcp.f32 %v565_v26  ;;  %v857_v31 = vpop.eup %856  ;;  %v1362_v36 = vmul.f32 %v853_v55, %v1184_v42  ;;  %v1449_v14 = vld [vmem:[#allocation14_spill] sm:$0xff]  ;;  %v1369_v26 = vmul.f32 %v855_v61, %v1445_v58 }
 0x1cb   :  { %v604_v37 = vpop.xlane.xlu1 %603  ;;  %v618_v4 = vpop.xlane.xlu0 %617  ;;  %866 = vrcp.f32 %v635_v5  ;;  %v407_v57 = vadd.f32 4.0, %v1449_v14 }
 0x1cc   :  { %v682_v49 = vmul.f32 %v843_v20, %v665_v63  ;;  %v650_v45 = vmul.f32 %v604_v37, %v1295_v2  ;;  %v657_v59 = vmul.f32 %v618_v4, %v586_v3  ;;  %v636_v2 = vadd.f32 %v1334_v11, %v476_v17  ;;  %v859_v27 = vpop.eup %858  ;;  %v1450_v37 = vld [vmem:[#allocation15_spill] sm:$0xff] }
 0x1cd   :  { %v566_v3 = vadd.f32 4.0, %v1289_v28  ;;  %v861_v16 = vpop.eup %860  ;;  %v478_v42 = vadd.f32 1e-09, %v1362_v36  ;;  %v408_v4 = vadd.f32 4.0, %v1450_v37 }
 0x1ce   :  { %713 = vst [vmem:[#allocation8] sm:$0xff] %v682_v49  ;;  %v666_v18 = vadd.f32 %v650_v45, %v490_v47  ;;  %v673_v35 = vadd.f32 %v657_v59, %v497_v40  ;;  %868 = vrcp.f32 %v636_v2  ;;  %v863_v17 = vpop.eup %862  ;;  %v578_v47 = vmul.f32 %v861_v16, %v1447_v51 }
 0x1cf   :  { %v620_v46 = vpop.xlane.xlu1 %619  ;;  %v446_v24 = vpop.xlane.xlu0 %445  ;;  %870 = vrcp.f32 %v566_v3 }
 0x1d0   :  { %v684_v1 = vmul.f32 %v845_v41, %v666_v18  ;;  %v698_v21 = vmul.f32 %v849_v30, %v673_v35  ;;  %v658_v9 = vmul.f32 %v620_v46, %v1309_v54  ;;  %872 = vrcp.f32 %v643_v7 }
 0x1d1   :  { %v491_v48 = vmul.f32 %v446_v24, %v1315_v23  ;;  %874 = vrcp.f32 %v644_v62  ;;  %v580_v23 = vmul.f32 %v863_v17, %v1448_v10  ;;  %v485_v18 = vadd.f32 1e-09, %v1369_v26 }
 0x1d2   :  { %714 = vst [vmem:[#allocation8 + $0x8] sm:$0xff] %v684_v1  ;;  %721 = vst [vmem:[#allocation8 + $0x40] sm:$0xff] %v698_v21  ;;  %v674_v22 = vadd.f32 %v658_v9, %v498_v0  ;;  %876 = vrcp.f32 %v407_v57  ;;  %v1382_v35 = vmul.f32 %v859_v27, %v1446_v33  ;;  %v637_v10 = vadd.f32 %v578_v47, %v477_v39 }
 0x1d3   :  { %v448_v44 = vpop.xlane.xlu1 %447  ;;  %v462_v53 = vpop.xlane.xlu0 %461  ;;  %878 = vrcp.f32 %v408_v4  ;;  %v638_v46 = vadd.f32 %v580_v23, %v478_v42 }
 0x1d4   :  { %v700_v54 = vmul.f32 %v857_v31, %v674_v22  ;;  %v865_v20 = vpop.eup %864  ;;  %v492_v45 = vmul.f32 %v448_v44, %v1319_v32  ;;  %v499_v58 = vmul.f32 %v462_v53, %v1326_v43 }
 0x1d5   :  { %v867_v49 = vpop.eup %866  ;;  %v594_v30 = vmul.f32 %v865_v20, %v1277_v52  ;;  %v486_v52 = vadd.f32 1e-09, %v1382_v35 }
 0x1d6   :  { %722 = vst [vmem:[#allocation8 + $0x48] sm:$0xff] %v700_v54 }
 0x1d7   :  { %v464_v13 = vpop.xlane.xlu1 %463  ;;  %v606_v29 = vpop.xlane.xlu0 %605  ;;  %v645_v9 = vadd.f32 %v594_v30, %v485_v18 }
 0x1d8   :  { %v651_v63 = vmul.f32 %v606_v29, %v1329_v38  ;;  %v567_v38 = vadd.f32 4.0, %v1297_v56  ;;  %v869_v15 = vpop.eup %868  ;;  %v500_v50 = vmul.f32 %v464_v13, %v1342_v8 }
 0x1d9   :  { %v871_v2 = vpop.eup %870 }
 0x1da   :  { %v667_v40 = vadd.f32 %v651_v63, %v491_v48  ;;  %v873_v43 = vpop.eup %872  ;;  %880 = vrcp.f32 %v567_v38  ;;  %v596_v21 = vmul.f32 %v871_v2, %v1289_v28 }
 0x1db   :  { %v608_v59 = vpop.xlane.xlu1 %607  ;;  %v622_v41 = vpop.xlane.xlu0 %621  ;;  %882 = vrcp.f32 %v637_v10  ;;  %v1452_v10 = vld [vmem:[#allocation22_spill] sm:$0xff] }
 0x1dc   :  { %v686_v19 = vmul.f32 %v867_v49, %v667_v40  ;;  %v652_v51 = vmul.f32 %v608_v59, %v1334_v11  ;;  %v659_v5 = vmul.f32 %v622_v41, %v1346_v60  ;;  %v568_v11 = vadd.f32 4.0, %v1305_v34  ;;  %v875_v6 = vpop.eup %874 }
 0x1dd   :  { %884 = vrcp.f32 %v638_v46  ;;  %v877_v8 = vpop.eup %876  ;;  %v646_v31 = vadd.f32 %v596_v21, %v486_v52  ;;  %v1454_v46 = vld [vmem:[#allocation21_spill] sm:$0xff] }
 0x1de   :  { %715 = vst [vmem:[#allocation8 + $0x10] sm:$0xff] %v686_v19  ;;  %v668_v32 = vadd.f32 %v652_v51, %v492_v45  ;;  %v675_v3 = vadd.f32 %v659_v5, %v499_v58  ;;  %886 = vrcp.f32 %v568_v11  ;;  %v879_v53 = vpop.eup %878  ;;  %v438_v16 = vmul.f32 %v877_v8, %v1449_v14  ;;  %v1451_v19 = vld [vmem:[#allocation23_spill] sm:$0xff] }
 0x1df   :  { %v624_v60 = vpop.xlane.xlu1 %623  ;;  %v450_v24 = vpop.xlane.xlu0 %449  ;;  %888 = vrcp.f32 %v645_v9 }
 0x1e0   :  { %v688_v0 = vmul.f32 %v869_v15, %v668_v32  ;;  %v702_v33 = vmul.f32 %v873_v43, %v675_v3  ;;  %v660_v1 = vmul.f32 %v624_v60, %v1354_v12  ;;  %v493_v27 = vmul.f32 %v450_v24, %v1358_v25  ;;  %v1453_v3 = vld [vmem:[#allocation19_spill] sm:$0xff]  ;;  %v1455_v24 = vld [vmem:[#allocation18_spill] sm:$0xff] }
 0x1e1   :  { %890 = vrcp.f32 %v646_v31  ;;  %v487_v4 = vadd.f32 1e-09, %v438_v16  ;;  %v440_v25 = vmul.f32 %v879_v53, %v1450_v37 }
 0x1e2   :  { %716 = vst [vmem:[#allocation8 + $0x18] sm:$0xff] %v688_v0  ;;  %723 = vst [vmem:[#allocation8 + $0x50] sm:$0xff] %v702_v33  ;;  %v676_v55 = vadd.f32 %v660_v1, %v500_v50  ;;  %892 = vrcp.f32 %v1451_v19 }
 0x1e3   :  { %v452_v7 = vpop.xlane.xlu1 %451  ;;  %v466_v61 = vpop.xlane.xlu0 %465  ;;  %894 = vrcp.f32 %v1452_v10 }
 0x1e4   :  { %v704_v22 = vmul.f32 %v875_v6, %v676_v55  ;;  %v881_v54 = vpop.eup %880  ;;  %v494_v13 = vmul.f32 %v452_v7, %v1362_v36  ;;  %v501_v48 = vmul.f32 %v466_v61, %v1369_v26 }
 0x1e5   :  { %v883_v57 = vpop.eup %882 }
 0x1e6   :  { %724 = vst [vmem:[#allocation8 + $0x58] sm:$0xff] %v704_v22 }
 0x1e7   :  { %v468_v12 = vpop.xlane.xlu1 %467  ;;  %v610_v44 = vpop.xlane.xlu0 %609 }
 0x1e8   :  { %v653_v28 = vmul.f32 %v610_v44, %v578_v47  ;;  %v885_v42 = vpop.eup %884  ;;  %v598_v47 = vmul.f32 %v881_v54, %v1297_v56  ;;  %v502_v59 = vmul.f32 %v468_v12, %v1382_v35 }
 0x1e9   :  { %v887_v40 = vpop.eup %886 }
 0x1ea   :  { %v669_v62 = vadd.f32 %v653_v28, %v493_v27  ;;  %v889_v38 = vpop.eup %888  ;;  %v600_v51 = vmul.f32 %v887_v40, %v1305_v34  ;;  %v647_v37 = vadd.f32 %v598_v47, %v487_v4 }
 0x1eb   :  { %v612_v29 = vpop.xlane.xlu1 %611  ;;  %v626_v17 = vpop.xlane.xlu0 %625 }
 0x1ec   :  { %v690_v63 = vmul.f32 %v883_v57, %v669_v62  ;;  %v654_v20 = vmul.f32 %v612_v29, %v580_v23  ;;  %v661_v39 = vmul.f32 %v626_v17, %v594_v30  ;;  %v488_v23 = vadd.f32 1e-09, %v440_v25  ;;  %v891_v5 = vpop.eup %890 }
 0x1ed   :  { %896 = vrcp.f32 %v647_v37  ;;  %v893_v60 = vpop.eup %892 }
 0x1ee   :  { %717 = vst [vmem:[#allocation8 + $0x20] sm:$0xff] %v690_v63  ;;  %v670_v14 = vadd.f32 %v654_v20, %v494_v13  ;;  %v677_v49 = vadd.f32 %v661_v39, %v501_v48  ;;  %v648_v2 = vadd.f32 %v600_v51, %v488_v23  ;;  %v895_v6 = vpop.eup %894 }
 0x1ef   :  { %v628_v45 = vpop.xlane.xlu1 %627  ;;  %v454_v36 = vpop.xlane.xlu0 %453 }
 0x1f0   :  { %v692_v41 = vmul.f32 %v885_v42, %v670_v14  ;;  %v706_v26 = vmul.f32 %v889_v38, %v677_v49  ;;  %v662_v58 = vmul.f32 %v628_v45, %v596_v21  ;;  %v495_v43 = vmul.f32 %v454_v36, %v1453_v3  ;;  %v1456_v21 = vld [vmem:[#allocation20_spill] sm:$0xff] }
 0x1f1   :  { %898 = vrcp.f32 %v648_v2 }
 0x1f2   :  { %718 = vst [vmem:[#allocation8 + $0x28] sm:$0xff] %v692_v41  ;;  %725 = vst [vmem:[#allocation8 + $0x60] sm:$0xff] %v706_v26  ;;  %v678_v56 = vadd.f32 %v662_v58, %v502_v59 }
 0x1f3   :  { %v456_v15 = vpop.xlane.xlu1 %455  ;;  %v470_v18 = vpop.xlane.xlu0 %469 }
 0x1f4   :  { %v708_v30 = vmul.f32 %v891_v5, %v678_v56  ;;  %v496_v50 = vmul.f32 %v456_v15, %v1455_v24  ;;  %v503_v1 = vmul.f32 %v470_v18, %v438_v16 }
 0x1f6   :  { %726 = vst [vmem:[#allocation8 + $0x68] sm:$0xff] %v708_v30 }
 0x1f7   :  { %v472_v35 = vpop.xlane.xlu1 %471  ;;  %v614_v32 = vpop.xlane.xlu0 %613 }
 0x1f8   :  { %v655_v11 = vmul.f32 %v614_v32, %v1454_v46  ;;  %v897_v22 = vpop.eup %896  ;;  %v504_v31 = vmul.f32 %v472_v35, %v440_v25 }
 0x1fa   :  { %v671_v34 = vadd.f32 %v655_v11, %v495_v43 }
 0x1fb   :  { %v616_v0 = vpop.xlane.xlu1 %615  ;;  %v630_v33 = vpop.xlane.xlu0 %629 }
 0x1fc   :  { %v694_v52 = vmul.f32 %v893_v60, %v671_v34  ;;  %v656_v9 = vmul.f32 %v616_v0, %v1456_v21  ;;  %v663_v55 = vmul.f32 %v630_v33, %v598_v47  ;;  %v899_v28 = vpop.eup %898 }
 0x1fe   :  { %719 = vst [vmem:[#allocation8 + $0x30] sm:$0xff] %v694_v52  ;;  %v672_v7 = vadd.f32 %v656_v9, %v496_v50  ;;  %v679_v61 = vadd.f32 %v663_v55, %v503_v1 }
 0x1ff   :  { %v632_v8 = vpop.xlane.xlu1 %631 }
 0x200   :  { %v696_v12 = vmul.f32 %v895_v6, %v672_v7  ;;  %v710_v44 = vmul.f32 %v897_v22, %v679_v61  ;;  %v664_v53 = vmul.f32 %v632_v8, %v600_v51 }
 0x202   :  { %720 = vst [vmem:[#allocation8 + $0x38] sm:$0xff] %v696_v12  ;;  %727 = vst [vmem:[#allocation8 + $0x70] sm:$0xff] %v710_v44  ;;  %v680_v27 = vadd.f32 %v664_v53, %v504_v31 }
 0x204   :  { %v712_v54 = vmul.f32 %v899_v28, %v680_v27 }
 0x206   :  { %728 = vst [vmem:[#allocation8 + $0x78] sm:$0xff] %v712_v54 }
 0x207   :  { %977 = shalt.err (!%p974_p0)
}
 0x208   :  { %s978_s29 = scalar_lea.hbm %s1422_s3, 2048 }
 0x209   :  { %p979_p1 = scmp.ne.s32.totalorder %s1422_s3, %s978_s29  ;;  %p982_p2 = scmp.lt.u32.totalorder %s978_s29, %s1422_s3 }
 0x20b   :  { %p984_p3 = pnand %p982_p2, %p979_p1 }
 0x20d   :  { %987 = shalt.err (!%p984_p3)
}
 0x20e   :  { %740 = dma.vmem_to_hbm [thread:$0]  %s735_s25, 2048, %s1422_s3, [#allocation4], %s995_s22, %s995_s22, %s996_s23  }
 0x20f   :  { %992 = dma.done.wait [#allocation4], 2048  }
 0x210   :  { %993 = vsyncadd [#allocation4], 4294965248 }
 0x211   :  { %744 = vsyncpa [#allocation3], 1 }
 0x212   :  { %745 = vsyncpa [#allocation6], 1 }
 0x213   :  { %746 = vsyncpa [#allocation4], 1 }

</bundles_post_ra>
